<compile_context>
chip_gen: v5e
topology: v5e:2x2
jax: 0.10.0
libtpu: 0.0.40
codegen_flags: <defaults>
</compile_context>

<pallas_src>
import functools
import math

import jax
import jax.numpy as jnp
from jax import lax
from jax.experimental import pallas as pl
from jax.experimental.pallas import tpu as pltpu


# --------------------------- small helpers ------------------------------------

def _gelu_tanh(x):
    # TODO(synk): PyTorch nn.GELU() is erf-exact; tanh form used here (EUP-friendly,
    # erf is not guaranteed to lower in Mosaic). Max abs deviation ~3e-4.
    c = 0.7978845608028654  # sqrt(2/pi)
    return 0.5 * x * (1.0 + jnp.tanh(c * (x + 0.044715 * x * x * x)))


def _nbytes(shape, dtype):
    n = 1
    for s in shape:
        n *= int(s)
    return n * jnp.dtype(dtype).itemsize


def _mosaic_params(dims, block_bytes, scratch_bytes=0):
    # Explicit VMEM budget: double-buffered blocks + scratch, clamped so the
    # request is valid on v5e (16 MiB scoped default) and v7x (64 MiB physical).
    est = 2 * block_bytes + scratch_bytes
    limit = int(min(64 * 2**20, max(32 * 2**20, 2 * est)))
    return pltpu.CompilerParams(dimension_semantics=dims, vmem_limit_bytes=limit)


def _choose_tm(m):
    """Row-tile: big tiles amortize ~0.35us/step, minimal padding waste, and
    >=2 grid steps so both v7x TensorCores get work on the 'parallel' axis."""
    best = None
    for t in (512, 256, 128, 64, 32, 16, 8):
        steps = -(-m // t)
        pad = steps * t - m
        cost = pad + 24 * steps + (256 if steps < 2 else 0)
        if best is None or cost < best[0]:
            best = (cost, t)
    t = best[1]
    return t, -(-m // t) * t


def _choose_tc(c_mid):
    for t in (512, 256, 128):
        if c_mid % t == 0:
            return t
    return c_mid


def _pad_rows(x2d, m_pad):
    m = x2d.shape[0]
    if m_pad == m:
        return x2d
    return jnp.pad(x2d, ((0, m_pad - m), (0, 0)))


# --------------------------- kernels -------------------------------------------

def _qkv_proj_kernel(x_ref, w_ref, b_ref, o_ref):
    """qkv = x @ W_qkv + b_qkv. bf16 operands, f32 MXU accumulate."""
    y = jnp.dot(x_ref[...].astype(jnp.bfloat16), w_ref[...],
                preferred_element_type=jnp.float32)
    o_ref[...] = (y + b_ref[...]).astype(o_ref.dtype)


def _mha_kernel(qkv_ref, o_ref, *, num_head, head_dim):
    """All heads of one batch. qkv_ref: (S, 3E) lane-dense; o_ref: (S, E)."""
    E = num_head * head_dim
    qkv = qkv_ref[...]                                  # one dense load
    q = qkv[:, :E].astype(jnp.bfloat16)                 # 1/sqrt(dh) folded into W_q/b_q
    k = qkv[:, E:2 * E].astype(jnp.bfloat16)
    v = qkv[:, 2 * E:].astype(jnp.bfloat16)
    nt = (((1,), (1,)), ((), ()))                       # q @ k^T without a transpose op
    outs = []
    for h in range(num_head):
        lo, hi = h * head_dim, (h + 1) * head_dim
        s = lax.dot_general(q[:, lo:hi], k[:, lo:hi], nt,
                            preferred_element_type=jnp.float32)       # (S, S)
        m = jnp.max(s, axis=-1, keepdims=True)
        p = jnp.exp(s - m)
        inv = pl.reciprocal(jnp.sum(p, axis=-1, keepdims=True), approx=True)  # EUP
        p = (p * inv).astype(jnp.bfloat16)
        outs.append(jnp.dot(p, v[:, lo:hi], preferred_element_type=jnp.float32))
    # Assemble all heads into one lane-dense (S, E) tile -> single dense store.
    o_ref[...] = jnp.concatenate(outs, axis=-1).astype(o_ref.dtype)


def _proj_residual_ln_kernel(x_ref, w_ref, b_ref, r_ref, g_ref, bb_ref, o_ref, *, eps):
    """o = LayerNorm(r + x @ w + b), fused epilogue."""
    y = jnp.dot(x_ref[...].astype(jnp.bfloat16), w_ref[...],
                preferred_element_type=jnp.float32)
    s = y + b_ref[...] + r_ref[...].astype(jnp.float32)
    mu = jnp.mean(s, axis=-1, keepdims=True)
    d = s - mu
    var = jnp.mean(d * d, axis=-1, keepdims=True)
    inv = lax.rsqrt(var + eps)                          # EUP
    o_ref[...] = (d * inv * g_ref[...] + bb_ref[...]).astype(o_ref.dtype)


def _ffn_fused_kernel(x_ref, w1_ref, b1_ref, w2_ref, b2_ref, g_ref, bb_ref,
                      o_ref, acc_ref, *, eps):
    """o = LayerNorm(x + fc2(GELU(fc1(x)))). c_mid tiled on grid axis 1 (reduction);
    fc2 partials accumulated in a VMEM f32 scratch; LN in the finalize epilogue."""
    j = pl.program_id(1)

    @pl.when(j == 0)
    def _init():
        acc_ref[...] = jnp.zeros_like(acc_ref)

    h = jnp.dot(x_ref[...].astype(jnp.bfloat16), w1_ref[...],
                preferred_element_type=jnp.float32)      # (tm, tc)
    h = _gelu_tanh(h + b1_ref[...])
    acc_ref[...] += jnp.dot(h.astype(jnp.bfloat16), w2_ref[...],
                            preferred_element_type=jnp.float32)        # (tm, E)

    @pl.when(j == pl.num_programs(1) - 1)
    def _finalize():
        s = acc_ref[...] + b2_ref[...] + x_ref[...].astype(jnp.float32)  # x == residual
        mu = jnp.mean(s, axis=-1, keepdims=True)
        d = s - mu
        var = jnp.mean(d * d, axis=-1, keepdims=True)
        inv = lax.rsqrt(var + eps)
        o_ref[...] = (d * inv * g_ref[...] + bb_ref[...]).astype(o_ref.dtype)


# --------------------------- wrappers -------------------------------------------

def qkv_projection(x, w_bf16, b, *, tm):
    M, E = x.shape
    N = w_bf16.shape[1]
    blk = (_nbytes((tm, E), x.dtype) + _nbytes((E, N), w_bf16.dtype)
           + _nbytes((1, N), b.dtype) + _nbytes((tm, N), x.dtype))
    return pl.pallas_call(
        _qkv_proj_kernel,
        out_shape=jax.ShapeDtypeStruct((M, N), x.dtype),
        grid_spec=pltpu.PrefetchScalarGridSpec(
            num_scalar_prefetch=0,
            grid=(M // tm,),
            in_specs=[
                pl.BlockSpec((tm, E), lambda i: (i, 0)),
                pl.BlockSpec((E, N), lambda i: (0, 0)),
                pl.BlockSpec((1, N), lambda i: (0, 0)),
            ],
            out_specs=pl.BlockSpec((tm, N), lambda i: (i, 0)),
        ),
        compiler_params=_mosaic_params(("parallel",), blk),
    )(x, w_bf16, b)


def mha_attention(qkv_bse, *, num_head, head_dim):
    B, S, threeE = qkv_bse.shape
    E = num_head * head_dim
    blk = _nbytes((S, threeE), qkv_bse.dtype) + _nbytes((S, E), qkv_bse.dtype)
    scratch = 2 * _nbytes((S, S), jnp.float32)          # live score / prob tiles
    return pl.pallas_call(
        functools.partial(_mha_kernel, num_head=num_head, head_dim=head_dim),
        out_shape=jax.ShapeDtypeStruct((B, S, E), qkv_bse.dtype),
        grid_spec=pltpu.PrefetchScalarGridSpec(
            num_scalar_prefetch=0,
            grid=(B,),
            in_specs=[pl.BlockSpec((None, S, threeE), lambda b: (b, 0, 0))],
            out_specs=pl.BlockSpec((None, S, E), lambda b: (b, 0, 0)),
        ),
        compiler_params=_mosaic_params(("parallel",), blk, scratch),
    )(qkv_bse)


def proj_residual_layernorm(x, w_bf16, b, residual, gamma, beta, *, tm, eps=1e-5):
    M, K = x.shape
    N = w_bf16.shape[1]
    blk = (_nbytes((tm, K), x.dtype) + _nbytes((K, N), w_bf16.dtype)
           + _nbytes((tm, N), residual.dtype) + _nbytes((tm, N), x.dtype)
           + 3 * _nbytes((1, N), jnp.float32))
    return pl.pallas_call(
        functools.partial(_proj_residual_ln_kernel, eps=eps),
        out_shape=jax.ShapeDtypeStruct((M, N), x.dtype),
        grid_spec=pltpu.PrefetchScalarGridSpec(
            num_scalar_prefetch=0,
            grid=(M // tm,),
            in_specs=[
                pl.BlockSpec((tm, K), lambda i: (i, 0)),
                pl.BlockSpec((K, N), lambda i: (0, 0)),
                pl.BlockSpec((1, N), lambda i: (0, 0)),
                pl.BlockSpec((tm, N), lambda i: (i, 0)),
                pl.BlockSpec((1, N), lambda i: (0, 0)),
                pl.BlockSpec((1, N), lambda i: (0, 0)),
            ],
            out_specs=pl.BlockSpec((tm, N), lambda i: (i, 0)),
        ),
        compiler_params=_mosaic_params(("parallel",), blk),
    )(x, w_bf16, b, residual, gamma, beta)


def ffn_residual_layernorm(x, w1_bf16, b1, w2_bf16, b2, gamma, beta, *, tm, tc, eps=1e-5):
    M, E = x.shape
    C = w1_bf16.shape[1]
    blk = (_nbytes((tm, E), x.dtype) + _nbytes((E, tc), w1_bf16.dtype)
           + _nbytes((1, tc), b1.dtype) + _nbytes((tc, E), w2_bf16.dtype)
           + 3 * _nbytes((1, E), jnp.float32) + _nbytes((tm, E), x.dtype))
    scratch = _nbytes((tm, E), jnp.float32)
    return pl.pallas_call(
        functools.partial(_ffn_fused_kernel, eps=eps),
        out_shape=jax.ShapeDtypeStruct((M, E), x.dtype),
        grid_spec=pltpu.PrefetchScalarGridSpec(
            num_scalar_prefetch=0,
            grid=(M // tm, C // tc),
            in_specs=[
                pl.BlockSpec((tm, E), lambda i, j: (i, 0)),
                pl.BlockSpec((E, tc), lambda i, j: (0, j)),
                pl.BlockSpec((1, tc), lambda i, j: (0, j)),
                pl.BlockSpec((tc, E), lambda i, j: (j, 0)),
                pl.BlockSpec((1, E), lambda i, j: (0, 0)),
                pl.BlockSpec((1, E), lambda i, j: (0, 0)),
                pl.BlockSpec((1, E), lambda i, j: (0, 0)),
            ],
            out_specs=pl.BlockSpec((tm, E), lambda i, j: (i, 0)),
            scratch_shapes=[pltpu.VMEM((tm, E), jnp.float32)],
        ),
        compiler_params=_mosaic_params(("parallel", "arbitrary"), blk, scratch),
    )(x, w1_bf16, b1, w2_bf16, b2, gamma, beta)


# --------------------------- parameters -----------------------------------------

def init_params(key, c_in, c_mid, num_head):
    e = c_in
    ks = jax.random.split(key, 12)
    p = {"num_head": num_head}
    # Weights stored already transposed for right-multiplication: y = x @ W + b.
    p["w_qkv"] = (1.0 / math.sqrt(e)) * jax.random.normal(ks[0], (e, 3 * e), jnp.float32)
    p["b_qkv"] = 0.1 * jax.random.normal(ks[1], (1, 3 * e), jnp.float32)
    p["w_out"] = (1.0 / math.sqrt(e)) * jax.random.normal(ks[2], (e, e), jnp.float32)
    p["b_out"] = 0.1 * jax.random.normal(ks[3], (1, e), jnp.float32)
    p["w_fc1"] = (1.0 / math.sqrt(e)) * jax.random.normal(ks[4], (e, c_mid), jnp.float32)
    p["b_fc1"] = 0.1 * jax.random.normal(ks[5], (1, c_mid), jnp.float32)
    p["w_fc2"] = (1.0 / math.sqrt(c_mid)) * jax.random.normal(ks[6], (c_mid, e), jnp.float32)
    p["b_fc2"] = 0.1 * jax.random.normal(ks[7], (1, e), jnp.float32)
    p["ln1_g"] = 1.0 + 0.1 * jax.random.normal(ks[8], (1, e), jnp.float32)
    p["ln1_b"] = 0.1 * jax.random.normal(ks[9], (1, e), jnp.float32)
    p["ln2_g"] = 1.0 + 0.1 * jax.random.normal(ks[10], (1, e), jnp.float32)
    p["ln2_b"] = 0.1 * jax.random.normal(ks[11], (1, e), jnp.float32)
    return p


def prepare_kernel_params(p):
    """Kernel-ready params: weights pre-cast to bf16 (native MXU rate, half the
    weight HBM bytes) and the softmax 1/sqrt(dh) scale folded into the Q columns
    of the in-projection (removes a per-head VPU multiply in the kernel)."""
    e = p["w_qkv"].shape[0]
    dh = e // p["num_head"]
    scale = 1.0 / math.sqrt(dh)
    kp = dict(p)
    kp["w_qkv"] = p["w_qkv"].at[:, :e].multiply(scale).astype(jnp.bfloat16)
    kp["b_qkv"] = p["b_qkv"].at[:, :e].multiply(scale)
    kp["w_out"] = p["w_out"].astype(jnp.bfloat16)
    kp["w_fc1"] = p["w_fc1"].astype(jnp.bfloat16)
    kp["w_fc2"] = p["w_fc2"].astype(jnp.bfloat16)
    return kp


# --------------------------- forward ---------------------------------------------

def transformer_encoder_layer_forward(src, kp):
    """forward_post with pos=None, masks=None, dropout=0 (module defaults)."""
    B, S, E = src.shape
    H = kp["num_head"]
    dh = E // H
    M = B * S

    tm, m_pad = _choose_tm(M)
    tc = _choose_tc(kp["w_fc1"].shape[1])

    x2d = src.reshape(M, E)
    x2d_p = _pad_rows(x2d, m_pad)

    # ---- fused QKV in-projection: one (M,E)@(E,3E) matmul, lane-dense output ----
    qkv = qkv_projection(x2d_p, kp["w_qkv"], kp["b_qkv"], tm=tm)
    qkv_bse = qkv[:M].reshape(B, S, 3 * E)      # free row-major reshape (slice only if padded)

    # ---- multi-head self-attention: grid over batch, all heads per step; q/k/v
    #      split in-kernel from the lane-dense (S,3E) block -> no XLA transposes ----
    attn = mha_attention(qkv_bse, num_head=H, head_dim=dh)          # (B, S, E)
    attn2d_p = _pad_rows(attn.reshape(M, E), m_pad)

    # ---- out-proj + residual + LayerNorm1 (fused epilogue) ----
    x1 = proj_residual_layernorm(attn2d_p, kp["w_out"], kp["b_out"],
                                 x2d_p, kp["ln1_g"], kp["ln1_b"], tm=tm)

    # ---- fc1 + GELU + fc2 + residual + LayerNorm2, fully fused: the (M, c_mid)
    #      intermediate lives only in VMEM, never round-trips HBM ----
    out = ffn_residual_layernorm(x1, kp["w_fc1"], kp["b_fc1"],
                                 kp["w_fc2"], kp["b_fc2"],
                                 kp["ln2_g"], kp["ln2_b"], tm=tm, tc=tc)

    return out[:M].reshape(B, S, E)


# --------------------------- pure-JAX reference -----------------------------------

def _layer_norm_ref(x, g, b, eps=1e-5):
    mu = jnp.mean(x, axis=-1, keepdims=True)
    var = jnp.mean((x - mu) ** 2, axis=-1, keepdims=True)
    return (x - mu) * lax.rsqrt(var + eps) * g + b


def transformer_encoder_layer_reference(src, p):
    B, S, E = src.shape
    H = p["num_head"]
    dh = E // H

    qkv = src @ p["w_qkv"] + p["b_qkv"]                       # (B,S,3E)
    qkv = qkv.reshape(B, S, 3, H, dh)
    q = jnp.transpose(qkv[:, :, 0], (0, 2, 1, 3))             # (B,H,S,dh)
    k = jnp.transpose(qkv[:, :, 1], (0, 2, 1, 3))
    v = jnp.transpose(qkv[:, :, 2], (0, 2, 1, 3))
    s = jnp.einsum('bhqd,bhkd->bhqk', q, k) / math.sqrt(dh)
    a = jax.nn.softmax(s, axis=-1)
    o = jnp.einsum('bhqk,bhkd->bhqd', a, v)
    o = jnp.transpose(o, (0, 2, 1, 3)).reshape(B, S, E)
    attn_out = o @ p["w_out"] + p["b_out"]

    x = _layer_norm_ref(src + attn_out, p["ln1_g"], p["ln1_b"])
    h = jax.nn.gelu(x @ p["w_fc1"] + p["b_fc1"], approximate=False)   # PyTorch nn.GELU()
    y = h @ p["w_fc2"] + p["b_fc2"]
    return _layer_norm_ref(x + y, p["ln2_g"], p["ln2_b"])


# --------------------------- main --------------------------------------------------

if __name__ == "__main__":
    B, S, E = 2, 64, 128        # batch, sequence, embed dim (c_in)
    C_MID, NUM_HEAD = 256, 8    # small c_mid for the demo; module-default heads

    key = jax.random.PRNGKey(0)
    kx, kp = jax.random.split(key)
    src = jax.random.normal(kx, (B, S, E), jnp.float32)
    params = init_params(kp, E, C_MID, NUM_HEAD)
    kparams = prepare_kernel_params(params)

    out = transformer_encoder_layer_forward(src, kparams)
    out = jax.block_until_ready(out)

    ref = transformer_encoder_layer_reference(src, params)
    assert out.shape == (B, S, E), out.shape
    max_err = float(jnp.max(jnp.abs(out - ref)))
    # bf16 MXU operands vs f32 reference: expect ~1e-2-scale deviation (+ tanh GELU).
    if max_err > 7.5e-2:
        raise SystemExit(f"MISMATCH vs reference: max_abs_err={max_err}")
    print("KERNEL_OK")
</pallas_src>

<mosaic_0001>
module attributes {stable_mosaic.version = 11 : i64} {
  func.func @_qkv_proj_kernel(%arg0: i32, %arg1: memref<64x128xf32, #tpu.memory_space<vmem>>, %arg2: memref<128x384xbf16, #tpu.memory_space<vmem>>, %arg3: memref<1x384xf32, #tpu.memory_space<vmem>>, %arg4: memref<64x384xf32, #tpu.memory_space<vmem>>) attributes {dimension_semantics = [#tpu.dimension_semantics<parallel>], iteration_bounds = array<i64: 2>, scalar_prefetch = 0 : i64, scratch_operands = 0 : i64, tpu.core_type = #tpu.core_type<tc>, window_params = [{transform_indices = @transform_0, window_bounds = array<i64: 64, 128>}, {pipeline_mode = #tpu.pipeline_mode<synchronous>, transform_indices = @transform_1, window_bounds = array<i64: 128, 384>}, {pipeline_mode = #tpu.pipeline_mode<synchronous>, transform_indices = @transform_2, window_bounds = array<i64: 1, 384>}, {transform_indices = @transform_3, window_bounds = array<i64: 64, 384>}]} {
    %c0 = arith.constant 0 : index
    %c0_0 = arith.constant 0 : index
    %0 = vector.load %arg1[%c0, %c0_0] : memref<64x128xf32, #tpu.memory_space<vmem>>, vector<64x128xf32>
    %1 = arith.truncf %0 : vector<64x128xf32> to vector<64x128xbf16>
    %c0_1 = arith.constant 0 : index
    %c0_2 = arith.constant 0 : index
    %2 = vector.load %arg2[%c0_1, %c0_2] : memref<128x384xbf16, #tpu.memory_space<vmem>>, vector<128x384xbf16>
    %cst = arith.constant dense<0.000000e+00> : vector<64x384xf32>
    %3 = tpu.matmul %1, %2, %cst {dimension_numbers = #tpu.dot_dimension_numbers<[1], [0], [0], [1], [0, 0, 1, 1], [], []>} : vector<64x128xbf16>, vector<128x384xbf16>, vector<64x384xf32> -> vector<64x384xf32>
    %c0_3 = arith.constant 0 : index
    %c0_4 = arith.constant 0 : index
    %4 = vector.load %arg3[%c0_3, %c0_4] : memref<1x384xf32, #tpu.memory_space<vmem>>, vector<1x384xf32>
    %5 = vector.broadcast %4 : vector<1x384xf32> to vector<64x384xf32>
    %6 = arith.addf %3, %5 : vector<64x384xf32>
    %c0_5 = arith.constant 0 : index
    %c0_6 = arith.constant 0 : index
    %7 = vector.load %arg4[%c0_5, %c0_6] : memref<64x384xf32, #tpu.memory_space<vmem>>, vector<64x384xf32>
    tpu.vector_store %arg4[%c0_5, %c0_6], %6 {strides = array<i32>} : memref<64x384xf32, #tpu.memory_space<vmem>>, vector<64x384xf32>,
    return
  }
  func.func @transform_0(%arg0: i32) -> (i32, i32) {
    %c0_i32 = arith.constant 0 : i32
    %c0_i32_0 = arith.constant 0 : i32
    return %arg0, %c0_i32 : i32, i32
  }
  func.func @transform_1(%arg0: i32) -> (i32, i32) {
    %c0_i32 = arith.constant 0 : i32
    %c0_i32_0 = arith.constant 0 : i32
    %c0_i32_1 = arith.constant 0 : i32
    return %c0_i32, %c0_i32_0 : i32, i32
  }
  func.func @transform_2(%arg0: i32) -> (i32, i32) {
    %c0_i32 = arith.constant 0 : i32
    %c0_i32_0 = arith.constant 0 : i32
    %c0_i32_1 = arith.constant 0 : i32
    return %c0_i32, %c0_i32_0 : i32, i32
  }
  func.func @transform_3(%arg0: i32) -> (i32, i32) {
    %c0_i32 = arith.constant 0 : i32
    %c0_i32_0 = arith.constant 0 : i32
    return %arg0, %c0_i32 : i32, i32
  }
}

</mosaic_0001>

<bundles_post_ra>
// kernel: tpu_custom_call.1
= control target key start
LH: loop header
LB: loop body
LE: loop exit
PB: predicated region body
PF: predicated region fallthrough
CT: control target
= control target key end

     0   :  { %8 = vsyncpa [#allocation3], 0  ;;  %s1234_s0 = inlined_call_operand.hbm [shape: f32[128,128], index: 0, kind: input, shape index: {}]   ;;  %s1235_s1 = inlined_call_operand.hbm [shape: bf16[128,384], index: 1, kind: input, shape index: {}]   ;;  %s1236_s2 = inlined_call_operand.hbm [shape: f32[1,384], index: 2, kind: input, shape index: {}]   ;;  %s1237_s3 = inlined_call_operand.hbm [shape: f32[128,384], index: 3, kind: output, shape index: {}]  }
   0x1   :  { %10 = vsyncpa [#allocation3 + $0x1], 0 }
   0x2   :  { %11 = vsyncpa [#allocation6], 0 }
   0x3   :  { %12 = vsyncpa [#allocation4], 0 }
   0x4   :  { %14 = vsyncpa [#allocation4 + $0x1], 0  ;;  %s1035_s12 = smov 0   ;;  %s1037_s13 = smov 0  }
   0x5   :  { %s1039_s14 = smov 0   ;;  %s1041_s15 = smov 0  }
   0x6 LB: > { %s1056_s16 = sadd.s32 4294967295, %s1005_s15   ;;  %s624_s17 = sadd.s32 4294967294, %s1005_s15   ;;  %s1005_s15 = sphi %s1041_s15, %s1247_s15   ;;  %s1001_s14 = sphi %s1039_s14, %s1246_s14   ;;  %s997_s13 = sphi %s1037_s13, %s1245_s13   ;;  %s993_s12 = sphi %s1035_s12, %s1244_s12  }
   0x7   : > { %p40_p0 = scmp.ne.s32.totalorder %s997_s13, %s993_s12  ;;  %p41_p1 = scmp.eq.s32.totalorder %s1056_s16, 0 }
   0x8   : > { %p106_p2 = scmp.eq.s32.totalorder %s1056_s16, 1  ;;  %p112_p3 = scmp.eq.s32.totalorder %s624_s17, 1 }
   0x9   : > { %p1065_p4 = por %p41_p1, %p40_p0  ;;  %p625_p5 = scmp.ge.s32.totalorder %s1005_s15, 1 }
   0xa   : > { %p1070_p6 = por %p112_p3, %p40_p0  ;;  %p119_p7 = scmp.lt.s32.totalorder %s1005_s15, 3 }
   0xb   : > { %s130_s22 = sshll.u32 %s1235_s1, 4  ;;  %s1007_s24 = smov [#allocation5]   ;;  %s131_s22 = int_to_ptr.hbm [resolvable:$true] %s130_s22 }
   0xc   : > { %p1078_p8 = pnand %p625_p5, %p119_p7  ;;  %s132_s25 = sshll.u32 %s1007_s24, 4  ;;  %s133_s25 = int_to_ptr.vmem [resolvable:$true] %s132_s25 }
   0xd   : > { %s145_s28 = sshll.u32 %s1236_s2, 4  ;;  %s1008_s29 = smov 192   ;;  %s146_s28 = int_to_ptr.hbm [resolvable:$true] %s145_s28 }
   0xe   : > { %p784_p9 = pneg %p1078_p8  ;;  %s1009_s30 = smov 12  }
   0xf   : > { %s1010_s4 = smov [#allocation7]   ;;  %s1091_s6 = sadd.s32 1, %s1005_s15  }
  0x10   : > { %p785_p10 = pnand %p784_p9, %p41_p1  ;;  %s147_s5 = sshll.u32 %s1010_s4, 4  ;;  %s148_s5 = int_to_ptr.vmem [resolvable:$true] %s147_s5 }
  0x11   : > { %s27_s7 = sadd.s32 1, %s1001_s14  ;;  %s24_s8 = ssub.s32 %s1005_s15, %s1091_s6 }
  0x12   : > { %787 = dma.hbm_to_vmem [thread:$0]  (!%p785_p10), %s131_s22, 3072, %s133_s25, [#allocation6], %s1008_s29, %s1008_s29, %s1009_s30  }
  0x13   : > { %790 = dma.hbm_to_vmem [thread:$0]  (!%p785_p10), %s146_s28, 48, %s148_s5, [#allocation6]  }
  0x14   : > { %p34_p12 = scmp.ne.s32.totalorder %s1001_s14, %s997_s13  ;;  %p25_p13 = scmp.eq.s32.totalorder %s24_s8, 0 }
  0x15   : > { %p35_p0 = scmp.eq.s32.totalorder %s1005_s15, 0  ;;  %p801_p5 = scmp.lt.s32.totalorder %s1005_s15, 2 }
  0x16   : > { %p1101_p3 = por %p106_p2, %p34_p12  ;;  %s158_s11 = sand.u32 1, %s1001_s14  }
  0x17   : > { %s1107_s10 = scalar_select %p25_p13, %s1001_s14, %s27_s7  }
  0x18   : > { %p36_p7 = por %p35_p0, %p34_p12  ;;  %s629_s17 = sshll.u32 %s158_s11, 6 }
  0x19   : > { %s737_s20 = sshll.u32 %s1005_s15, 6  ;;  %s162_s25 = scalar_lea.vmem [#allocation2], %s629_s17 }
  0x1a   : > { %s167_s24 = scalar_lea.hbm %s1234_s0, %s737_s20  ;;  %s170_s26 = sshll.u32 %s162_s25, 4  ;;  %s171_s26 = int_to_ptr.vmem [resolvable:$true] %s170_s26 }
  0x1b   : > { %s168_s27 = sshll.u32 %s167_s24, 4  ;;  %p1114_p2 = pnand %p801_p5, %p36_p7  ;;  %s169_s27 = int_to_ptr.hbm [resolvable:$true] %s168_s27 }
  0x1c   : > { %s159_s29 = scalar_lea.sflag [#allocation3], %s158_s11  ;;  %s905_s30 = sshra.s32 %s169_s27, 4  ;;  %s906_s30 = int_to_ptr.hbm [resolvable:$true] %s905_s30 }
  0x1d   : > { %s907_s4 = scalar_lea.hbm %s906_s30, 64  ;;  %p909_p10 = pneg %p1114_p2 }
  0x1e   : > { %p908_p9 = scmp.ne.s32.totalorder %s906_s30, %s907_s4  ;;  %s912_s8 = scalar_lea.hbm %s1234_s0, 128 }
  0x1f   : > { %p913_p0 = scmp.lt.s32.totalorder %s906_s30, %s1234_s0  ;;  %p914_p5 = scmp.lt.s32.totalorder %s912_s8, %s907_s4 }
  0x20   : > { %p910_p12 = pnand %p909_p10, %p908_p9 }
  0x21   : > { %p915_p7 = por %p914_p5, %p913_p0 }
  0x22   : > { %p911_p13 = pneg %p910_p12 }
  0x24   : > { %p916_p11 = pnand %p915_p7, %p911_p13 }
  0x26   : > { %919 = shalt.err (!%p916_p11)
}
  0x27   : > { %s1011_s11 = smov 128   ;;  %s1012_s21 = smov 8  }
  0x28   : > { %794 = dma.hbm_to_vmem [thread:$0]  (!%p1114_p2), %s169_s27, 1024, %s171_s26, %s159_s29, %s1011_s11, %s1011_s11, %s1012_s21  }
  0x29   : > { %182 = sbr.rel (%p1078_p8) target bundleno = 278 (0x116), region = 32  ;;  %s1131_s22 = sand.u32 (!%p1078_p8), 1, %s997_s13  }
  0x2a   : > { %s633_s24 = sshll.u32 (!%p1078_p8), %s1131_s22, 6  ;;  %s185_s25 = scalar_lea.sflag (!%p1078_p8), [#allocation3], %s1131_s22 }
  0x2b   : > { %s1135_s30 = scalar_lea.vmem (!%p1078_p8), [#allocation2], %s633_s24 }
  0x2e   : > { %980 = dma.done.wait (%p1065_p4), %s185_s25, 1024  }
  0x2f   : > { %982 = vsyncadd (%p1065_p4), %s185_s25, 4294966272 }
  0x30   : > { %984 = dma.done.wait (%p41_p1), [#allocation6], 3120  }
  0x31   : > { %986 = vsyncadd (%p41_p1), [#allocation6], 4294964176  ;;  %v759_v0 = vld [vmem:[#allocation5 + $0xac] sm:$0xf]  ;;  %v724_v1 = vld [vmem:[#allocation5 + $0xb4] sm:$0xf0] }
  0x32   : > { %v730_v2 = vld [vmem:[#allocation5 + $0xb0] sm:$0xf]  ;;  %v727_v3 = vor.u32 %v759_v0, %v724_v1  ;;  %v761_v4 = vld [vmem:[#allocation5 + $0xb8] sm:$0xf0]  ;;  %v756_v5 = vld [vmem:[#allocation5 + $0x94] sm:$0xf] }
  0x33   : > { %v712_v6 = vld [vmem:[#allocation5 + $0x9c] sm:$0xf0]  ;;  %v731_v7 = vor.u32 %v761_v4, %v730_v2  ;;  %v718_v8 = vld [vmem:[#allocation5 + $0x98] sm:$0xf]  ;;  %v758_v9 = vld [vmem:[#allocation5 + $0xa0] sm:$0xf0] }
  0x34   : > { %v722_v10 = vld [vmem:[#allocation5 + $0xa8] sm:$0xf]  ;;  %433 = vmatpush.bf16.msra.mxu1 %v727_v3  ;;  %v715_v11 = vor.u32 %v756_v5, %v712_v6  ;;  %v760_v12 = vld [vmem:[#allocation5 + $0xb0] sm:$0xf0]  ;;  %v719_v13 = vor.u32 %v758_v9, %v718_v8  ;;  %v753_v15 = vld [vmem:[#allocation5 + $0x7c] sm:$0xf] }
  0x35   : > { %462 = vmatpush.bf16.msra.mxu2 %v731_v7  ;;  %v723_v14 = vor.u32 %v760_v12, %v722_v10  ;;  %v700_v16 = vld [vmem:[#allocation5 + $0x84] sm:$0xf0]  ;;  %v710_v17 = vld [vmem:[#allocation5 + $0x90] sm:$0xf]  ;;  %v706_v18 = vld [vmem:[#allocation5 + $0x80] sm:$0xf] }
  0x36   : > { %v755_v19 = vld [vmem:[#allocation5 + $0x88] sm:$0xf0]  ;;  %v757_v20 = vld [vmem:[#allocation5 + $0x98] sm:$0xf0]  ;;  %v703_v22 = vor.u32 %v753_v15, %v700_v16  ;;  %v698_v23 = vld [vmem:[#allocation5 + $0x78] sm:$0xf] }
  0x37   : > { %762 = vmatpush.bf16.msra.mxu3 %v723_v14  ;;  %v711_v21 = vor.u32 %v757_v20, %v710_v17  ;;  %404 = vmatpush.bf16.msra.mxu0 %v723_v14  ;;  %v754_v24 = vld [vmem:[#allocation5 + $0x80] sm:$0xf0]  ;;  %v707_v25 = vor.u32 %v755_v19, %v706_v18  ;;  %v688_v27 = vld [vmem:[#allocation5 + $0x6c] sm:$0xf0]  ;;  %v694_v28 = vld [vmem:[#allocation5 + $0x68] sm:$0xf] }
  0x38   : > { %434 = vmatpush.bf16.msra.mxu1 %v715_v11  ;;  %v750_v26 = vld [vmem:[#allocation5 + $0x64] sm:$0xf]  ;;  %v752_v29 = vld [vmem:[#allocation5 + $0x70] sm:$0xf0]  ;;  %v699_v30 = vor.u32 %v754_v24, %v698_v23  ;;  %v686_v32 = vld [vmem:[#allocation5 + $0x60] sm:$0xf] }
  0x39   : > { %463 = vmatpush.bf16.msra.mxu2 %v719_v13  ;;  %v691_v31 = vor.u32 %v750_v26, %v688_v27  ;;  %v751_v33 = vld [vmem:[#allocation5 + $0x68] sm:$0xf0]  ;;  %v695_v34 = vor.u32 %v752_v29, %v694_v28  ;;  %v676_v36 = vld [vmem:[#allocation5 + $0x54] sm:$0xf0]  ;;  %v682_v37 = vld [vmem:[#allocation5 + $0x50] sm:$0xf] }
  0x3a   : > { %v747_v35 = vld [vmem:[#allocation5 + $0x4c] sm:$0xf]  ;;  %v749_v38 = vld [vmem:[#allocation5 + $0x58] sm:$0xf0]  ;;  %v687_v39 = vor.u32 %v751_v33, %v686_v32  ;;  %v674_v41 = vld [vmem:[#allocation5 + $0x48] sm:$0xf] }
  0x3b   : > { %763 = vmatpush.bf16.msra.mxu3 %v711_v21  ;;  %405 = vmatpush.bf16.msra.mxu0 %v711_v21  ;;  %v679_v40 = vor.u32 %v747_v35, %v676_v36  ;;  %v748_v42 = vld [vmem:[#allocation5 + $0x50] sm:$0xf0]  ;;  %v683_v43 = vor.u32 %v749_v38, %v682_v37  ;;  %v664_v45 = vld [vmem:[#allocation5 + $0x3c] sm:$0xf0]  ;;  %v670_v46 = vld [vmem:[#allocation5 + $0x38] sm:$0xf] }
  0x3c   : > { %435 = vmatpush.bf16.msra.mxu1 %v703_v22  ;;  %v744_v44 = vld [vmem:[#allocation5 + $0x34] sm:$0xf]  ;;  %v746_v47 = vld [vmem:[#allocation5 + $0x40] sm:$0xf0]  ;;  %v675_v48 = vor.u32 %v748_v42, %v674_v41  ;;  %v662_v50 = vld [vmem:[#allocation5 + $0x30] sm:$0xf] }
  0x3d   : > { %464 = vmatpush.bf16.msra.mxu2 %v707_v25  ;;  %v667_v49 = vor.u32 %v744_v44, %v664_v45  ;;  %v745_v51 = vld [vmem:[#allocation5 + $0x38] sm:$0xf0]  ;;  %v671_v52 = vor.u32 %v746_v47, %v670_v46  ;;  %v652_v54 = vld [vmem:[#allocation5 + $0x24] sm:$0xf0]  ;;  %v658_v55 = vld [vmem:[#allocation5 + $0x20] sm:$0xf] }
  0x3e   : > { %v741_v53 = vld [vmem:[#allocation5 + $0x1c] sm:$0xf]  ;;  %v743_v56 = vld [vmem:[#allocation5 + $0x28] sm:$0xf0]  ;;  %v663_v57 = vor.u32 %v745_v51, %v662_v50  ;;  %v650_v59 = vld [vmem:[#allocation5 + $0x18] sm:$0xf] }
  0x3f   : > { %764 = vmatpush.bf16.msra.mxu3 %v699_v30  ;;  %406 = vmatpush.bf16.msra.mxu0 %v699_v30  ;;  %v655_v58 = vor.u32 %v741_v53, %v652_v54  ;;  %v742_v60 = vld [vmem:[#allocation5 + $0x20] sm:$0xf0]  ;;  %v659_v61 = vor.u32 %v743_v56, %v658_v55  ;;  %v640_v63 = vld [vmem:[#allocation5 + $0xc] sm:$0xf0]  ;;  %v646_v0 = vld [vmem:[#allocation5 + $0x8] sm:$0xf] }
  0x40   : > { %436 = vmatpush.bf16.msra.mxu1 %v691_v31  ;;  %v738_v62 = vld [vmem:[#allocation5 + $0x4] sm:$0xf]  ;;  %v740_v1 = vld [vmem:[#allocation5 + $0x10] sm:$0xf0]  ;;  %v651_v3 = vor.u32 %v742_v60, %v650_v59  ;;  %v225_v5 = vld [vmem:[%s1135_s30 + $0x8] sm:$0xff]  ;;  %s770_s18 = smul.u32 192, %s1131_s22 }
  0x41   : > { %465 = vmatpush.bf16.msra.mxu2 %v695_v34  ;;  %v224_v2 = vld [vmem:[%s1135_s30] sm:$0xff]  ;;  %v643_v4 = vor.u32 %v738_v62, %v640_v63  ;;  %v739_v7 = vld [vmem:[#allocation5 + $0x8] sm:$0xf0]  ;;  %v647_v8 = vor.u32 %v740_v1, %v646_v0  ;;  %v226_v11 = vld [vmem:[%s1135_s30 + $0x10] sm:$0xff]  ;;  %s771_s26 = smul.u32 192, %s1056_s16  ;;  %s516_s16 = scalar_lea.sflag [#allocation4], %s1131_s22 }
  0x42   : > { %v638_v6 = vld [vmem:[#allocation5] sm:$0xf]  ;;  %v232_v9 = vpack.c.bf16 %v225_v5, %v224_v2  ;;  %v227_v12 = vld [vmem:[%s1135_s30 + $0x18] sm:$0xff]  ;;  %v229_v15 = vld [vmem:[%s1135_s30 + $0x28] sm:$0xff]  ;;  %s1157_s23 = scalar_lea.vmem [#allocation8], %s770_s18  ;;  %s955_s11 = scalar_lea.hbm %s1237_s3, 384 }
  0x43   : > { %765 = vmatpush.bf16.msra.mxu3 %v687_v39  ;;  %407 = vmatpush.bf16.msra.mxu0 %v687_v39  ;;  %v639_v10 = vor.u32 %v739_v7, %v638_v6  ;;  %v233_v13 = vpack.c.bf16 %v227_v12, %v226_v11  ;;  %v228_v14 = vld [vmem:[%s1135_s30 + $0x20] sm:$0xff]  ;;  %v230_v17 = vld [vmem:[%s1135_s30 + $0x30] sm:$0xff]  ;;  %v231_v18 = vld [vmem:[%s1135_s30 + $0x38] sm:$0xff]  ;;  %s528_s29 = scalar_lea.hbm %s1237_s3, %s771_s26  ;;  %s529_s4 = sshll.u32 %s1157_s23, 4  ;;  %s530_s4 = int_to_ptr.vmem [resolvable:$true] %s529_s4 }
  0x44   : > { %437 = vmatpush.bf16.msra.mxu1 %v679_v40  ;;  %v234_v16 = vpack.c.bf16 %v229_v15, %v228_v14  ;;  %v235_v19 = vpack.c.bf16 %v231_v18, %v230_v17  ;;  %v268_v20 = vld [vmem:[#allocation7] sm:$0x7]  ;;  %s531_s5 = sshll.u32 %s528_s29, 4  ;;  %s532_s5 = int_to_ptr.hbm [resolvable:$true] %s531_s5 }
  0x45   : > { %466 = vmatpush.bf16.msra.mxu2 %v683_v43  ;;  %v1154_v21 = vperm.slane %v268_v20, 1  ;;  %v1160_v24 = vperm.slane %v268_v20, 2  ;;  %v270_v25 = vperm.slane %v268_v20, 0  ;;  %s949_s7 = sshra.s32 %s532_s5, 4  ;;  %s950_s7 = int_to_ptr.hbm [resolvable:$true] %s949_s7 }
  0x46   : > { %s951_s8 = scalar_lea.hbm %s950_s7, 192  ;;  %p956_p11 = scmp.lt.s32.totalorder %s950_s7, %s1237_s3 }
  0x47   : > { %766 = vmatpush.bf16.msra.mxu3 %v675_v48  ;;  %408 = vmatpush.bf16.msra.mxu0 %v675_v48  ;;  %p952_p1 = scmp.ne.s32.totalorder %s950_s7, %s951_s8  ;;  %p957_p2 = scmp.lt.s32.totalorder %s955_s11, %s951_s8 }
  0x48   : > { %438 = vmatpush.bf16.msra.mxu1 %v667_v49 }
  0x49   : > { %467 = vmatpush.bf16.msra.mxu2 %v671_v52  ;;  %p953_p4 = pnand %p952_p1, %p1101_p3  ;;  %p958_p9 = por %p957_p2, %p956_p11 }
  0x4b   : > { %767 = vmatpush.bf16.msra.mxu3 %v663_v57  ;;  %409 = vmatpush.bf16.msra.mxu0 %v663_v57  ;;  %p954_p8 = pneg %p953_p4 }
  0x4c   : > { %439 = vmatpush.bf16.msra.mxu1 %v655_v58 }
  0x4d   : > { %468 = vmatpush.bf16.msra.mxu2 %v659_v61  ;;  %p959_p10 = pnand %p958_p9, %p954_p8 }
  0x4f   : > { %768 = vmatpush.bf16.msra.mxu3 %v651_v3  ;;  %410 = vmatpush.bf16.msra.mxu0 %v651_v3 }
  0x50   : > { %440 = vmatpush.bf16.msra.mxu1 %v643_v4 }
  0x51   : > { %469 = vmatpush.bf16.msra.mxu2 %v647_v8 }
  0x53   : > { %441 = vmatmul.bf16.vlgmr.msra.gmra.mxu1 %v232_v9  ;;  %769 = vmatpush.bf16.msra.mxu3 %v639_v10 }
  0x54   : > { %470 = vmatmul.bf16.vlgmr.msra.gmra.mxu2 %v232_v9  ;;  %411 = vmatpush.bf16.msra.mxu0 %v639_v10 }
  0x56   : > { %417 = vmatmul.bf16.vlgmr.msra.gmra.mxu3 %v233_v13 }
  0x57   : > { %412 = vmatmul.bf16.vlgmr.msra.gmra.mxu0 %v232_v9 }
  0x63   : > { %446 = vmatmul.bf16.gmra.mxu1 %v233_v13 }
  0x64   : > { %475 = vmatmul.bf16.gmra.mxu2 %v233_v13 }
  0x66   : > { %422 = vmatmul.bf16.gmra.mxu3 %v234_v16 }
  0x73   : > { %451 = vmatmul.bf16.gmra.mxu1 %v234_v16 }
  0x74   : > { %480 = vmatmul.bf16.gmra.mxu2 %v234_v16 }
  0x76   : > { %427 = vmatmul.bf16.gmra.mxu3 %v235_v19 }
  0x83   : > { %456 = vmatmul.bf16.gmra.mxu1 %v235_v19 }
  0x84   : > { %485 = vmatmul.bf16.gmra.mxu2 %v235_v19 }
  0xd0   : > { %v442_v22 = vpop.f32.mrf.mxu1 }
  0xd1   : > { %v443_v23 = vadd.f32 %v442_v22, %v1154_v21 }
  0xd3   : > { %492 = vst [vmem:[%s1157_s23 + $0x8] sm:$0xff] %v443_v23 }
  0xd4   : > { %v413_v32 = vpop.f32.mrf.mxu0 }
  0xd5   : > { %v414_v33 = vadd.f32 %v413_v32, %v270_v25 }
  0xd7   : > { %v471_v26 = vpop.f32.mrf.mxu2  ;;  %491 = vst [vmem:[%s1157_s23] sm:$0xff] %v414_v33 }
  0xd8   : > { %v472_v27 = vadd.f32 %v471_v26, %v1160_v24  ;;  %v444_v28 = vpop.f32.mrf.mxu1 }
  0xd9   : > { %v445_v29 = vadd.f32 %v444_v28, %v1154_v21  ;;  %v418_v30 = vpop.f32.mrf.mxu3 }
  0xda   : > { %493 = vst [vmem:[%s1157_s23 + $0x10] sm:$0xff] %v472_v27  ;;  %v419_v31 = vadd.f32 %v418_v30, %v270_v25 }
  0xdb   : > { %495 = vst [vmem:[%s1157_s23 + $0x20] sm:$0xff] %v445_v29 }
  0xdc   : > { %497 = vst [vmem:[%s1157_s23 + $0x30] sm:$0xff] %v419_v31  ;;  %v415_v40 = vpop.f32.mrf.mxu0 }
  0xdd   : > { %v416_v41 = vadd.f32 %v415_v40, %v270_v25 }
  0xdf   : > { %v473_v34 = vpop.f32.mrf.mxu2  ;;  %494 = vst [vmem:[%s1157_s23 + $0x18] sm:$0xff] %v416_v41 }
  0xe0   : > { %v474_v35 = vadd.f32 %v473_v34, %v1160_v24  ;;  %v447_v36 = vpop.f32.mrf.mxu1 }
  0xe1   : > { %v448_v37 = vadd.f32 %v447_v36, %v1154_v21  ;;  %v420_v38 = vpop.f32.mrf.mxu3 }
  0xe2   : > { %496 = vst [vmem:[%s1157_s23 + $0x28] sm:$0xff] %v474_v35  ;;  %v421_v39 = vadd.f32 %v420_v38, %v270_v25 }
  0xe3   : > { %498 = vst [vmem:[%s1157_s23 + $0x38] sm:$0xff] %v448_v37 }
  0xe4   : > { %500 = vst [vmem:[%s1157_s23 + $0x48] sm:$0xff] %v421_v39 }
  0xe7   : > { %v476_v42 = vpop.f32.mrf.mxu2 }
  0xe8   : > { %v477_v43 = vadd.f32 %v476_v42, %v1160_v24  ;;  %v449_v44 = vpop.f32.mrf.mxu1 }
  0xe9   : > { %v450_v45 = vadd.f32 %v449_v44, %v1154_v21  ;;  %v423_v46 = vpop.f32.mrf.mxu3 }
  0xea   : > { %499 = vst [vmem:[%s1157_s23 + $0x40] sm:$0xff] %v477_v43  ;;  %v424_v47 = vadd.f32 %v423_v46, %v270_v25 }
  0xeb   : > { %501 = vst [vmem:[%s1157_s23 + $0x50] sm:$0xff] %v450_v45 }
  0xec   : > { %503 = vst [vmem:[%s1157_s23 + $0x60] sm:$0xff] %v424_v47 }
  0xef   : > { %v478_v48 = vpop.f32.mrf.mxu2 }
  0xf0   : > { %v479_v49 = vadd.f32 %v478_v48, %v1160_v24  ;;  %v452_v50 = vpop.f32.mrf.mxu1 }
  0xf1   : > { %v453_v51 = vadd.f32 %v452_v50, %v1154_v21  ;;  %v425_v52 = vpop.f32.mrf.mxu3 }
  0xf2   : > { %502 = vst [vmem:[%s1157_s23 + $0x58] sm:$0xff] %v479_v49  ;;  %v426_v53 = vadd.f32 %v425_v52, %v270_v25 }
  0xf3   : > { %504 = vst [vmem:[%s1157_s23 + $0x68] sm:$0xff] %v453_v51 }
  0xf4   : > { %506 = vst [vmem:[%s1157_s23 + $0x78] sm:$0xff] %v426_v53 }
  0xf7   : > { %v481_v54 = vpop.f32.mrf.mxu2 }
  0xf8   : > { %v482_v55 = vadd.f32 %v481_v54, %v1160_v24  ;;  %v454_v56 = vpop.f32.mrf.mxu1 }
  0xf9   : > { %v455_v57 = vadd.f32 %v454_v56, %v1154_v21  ;;  %v428_v58 = vpop.f32.mrf.mxu3 }
  0xfa   : > { %505 = vst [vmem:[%s1157_s23 + $0x70] sm:$0xff] %v482_v55  ;;  %v429_v59 = vadd.f32 %v428_v58, %v270_v25 }
  0xfb   : > { %507 = vst [vmem:[%s1157_s23 + $0x80] sm:$0xff] %v455_v57 }
  0xfc   : > { %509 = vst [vmem:[%s1157_s23 + $0x90] sm:$0xff] %v429_v59 }
  0xff   : > { %v483_v60 = vpop.f32.mrf.mxu2 }
 0x100   : > { %v484_v61 = vadd.f32 %v483_v60, %v1160_v24  ;;  %v457_v62 = vpop.f32.mrf.mxu1 }
 0x101   : > { %v458_v63 = vadd.f32 %v457_v62, %v1154_v21  ;;  %v430_v0 = vpop.f32.mrf.mxu3 }
 0x102   : > { %508 = vst [vmem:[%s1157_s23 + $0x88] sm:$0xff] %v484_v61  ;;  %v431_v1 = vadd.f32 %v430_v0, %v270_v25 }
 0x103   : > { %510 = vst [vmem:[%s1157_s23 + $0x98] sm:$0xff] %v458_v63 }
 0x104   : > { %512 = vst [vmem:[%s1157_s23 + $0xa8] sm:$0xff] %v431_v1 }
 0x107   : > { %v486_v2 = vpop.f32.mrf.mxu2 }
 0x108   : > { %v487_v3 = vadd.f32 %v486_v2, %v1160_v24  ;;  %v459_v4 = vpop.f32.mrf.mxu1 }
 0x109   : > { %v460_v5 = vadd.f32 %v459_v4, %v1154_v21 }
 0x10a   : > { %511 = vst [vmem:[%s1157_s23 + $0xa0] sm:$0xff] %v487_v3 }
 0x10b   : > { %513 = vst [vmem:[%s1157_s23 + $0xb0] sm:$0xff] %v460_v5 }
 0x10f   : > { %v488_v6 = vpop.f32.mrf.mxu2 }
 0x110   : > { %v489_v7 = vadd.f32 %v488_v6, %v1160_v24 }
 0x112   : > { %514 = vst [vmem:[%s1157_s23 + $0xb8] sm:$0xff] %v489_v7 }
 0x113   : > { %962 = shalt.err (!%p959_p10)
}
 0x114   : > { %s1013_s22 = smov 384   ;;  %s1014_s25 = smov 24  }
 0x115   : > { %782 = dma.vmem_to_hbm [thread:$0]  (%p1101_p3), %s530_s4, 3072, %s532_s5, %s516_s16, %s1013_s22, %s1013_s22, %s1014_s25  }
 0x116 PF: > { %s546_s30 = sand.u32 1, %s993_s12   ;;  %p1243_p12 = scmp.ge.s32.totalorder %s1005_s15, 2 }
 0x117   : > { %s547_s18 = scalar_lea.sflag [#allocation4], %s546_s30 }
 0x118   : > { %p796_p13 = pnand %p1243_p12, %p1070_p6 }
 0x11a   : > { %p797_p0 = pneg %p796_p13 }
 0x11c   : > { %988 = dma.done.wait (%p797_p0), %s547_s18, 3072  }
 0x11d   : > { %990 = vsyncadd (%p797_p0), %s547_s18, 4294964224  ;;  %p17_p5 = scmp.ge.s32.totalorder %s1091_s6, 4   ;;  %s1244_s12 = smov %s997_s13 }
 0x11e   : > { %s1245_s13 = smov %s1001_s14  ;;  %s1246_s14 = smov %s1107_s10 }
 0x11f   : > { %s1247_s15 = smov %s1091_s6  ;;  %19 = sbr.rel (!%p17_p5) target bundleno = 6 (0x6), region = 85 }
 0x124   :  { %553 = vsyncpa [#allocation3], 1 }
 0x125   :  { %555 = vsyncpa [#allocation3 + $0x1], 1 }
 0x126   :  { %556 = vsyncpa [#allocation6], 1 }
 0x127   :  { %557 = vsyncpa [#allocation4], 1 }
 0x128   :  { %559 = vsyncpa [#allocation4 + $0x1], 1 }

</bundles_post_ra>
